<compile_context>
chip_gen: v5e
topology: v5e:2x2
jax: 0.10.0
libtpu: 0.0.40
codegen_flags: <defaults>
</compile_context>

<pallas_src>
import functools

import jax
import jax.numpy as jnp
from jax import lax
from jax.experimental import pallas as pl
from jax.experimental.pallas import tpu as pltpu

_NEG = -1e30  # finite "minus infinity": masks entries without creating inf/NaN arithmetic


def _round_up(x, m):
    return (x + m - 1) // m * m


def _drsl3_kernel(pred_ref, labels_ref, out_ref,
                  ce_acc, m_acc, l_acc, s_acc, *,
                  a, b, start, end, n_valid):
    t = pl.program_id(0)
    x = pred_ref[...]                                  # (TN, C), native dtype
    labels = labels_ref[...]                           # (TN, 1) int32
    TN, C = x.shape

    # Row-validity mask for the ragged last batch tile (block contents past the end of
    # the array are unspecified; mask with selects so NaNs cannot propagate).
    remaining = n_valid - t * TN                       # >= 1 on every grid step
    row_iota = lax.broadcasted_iota(jnp.int32, (TN, 1), 0)
    valid = row_iota < remaining                       # (TN, 1) bool

    iota_c = lax.broadcasted_iota(jnp.int32, (TN, C), 1)
    onehot = iota_c == labels                          # one true lane per valid row

    # ---- per-row cross entropy: ce = lse - label_logit (no logp matrix) ----
    row_max = jnp.max(x, axis=1, keepdims=True)                        # native dtype
    sumexp = jnp.sum(jnp.exp((x - row_max).astype(jnp.float32)),
                     axis=1, keepdims=True)                            # f32 accumulation
    lse = jnp.log(sumexp) + row_max.astype(jnp.float32)
    zero = jnp.zeros((), x.dtype)
    label_logit = jnp.sum(jnp.where(onehot, x, zero), axis=1,
                          keepdims=True).astype(jnp.float32)
    ce_rows = lse - label_logit                                        # (TN, 1) f32

    # ---- mean of descending-sorted non-label logits, ranks [start, end) ----
    # Exact with duplicates: per step one XLU max + one XLU count, mask every copy of the
    # current max and credit exactly the copies whose ranks fall inside [start, end).
    neg = jnp.asarray(_NEG, x.dtype)
    cur0 = jnp.where(onehot, neg, x)                   # drop the label logit (native dtype)
    start_f, end_f = float(start), float(end)

    def body(_, carry):
        cur, taken, acc = carry
        mx = jnp.max(cur, axis=1, keepdims=True)                        # XLU reduce
        eq = cur == mx
        cnt = jnp.sum(eq.astype(jnp.float32), axis=1, keepdims=True)    # multiplicity
        lo = jnp.maximum(taken, start_f)
        hi = jnp.minimum(taken + cnt, end_f)
        acc = acc + mx.astype(jnp.float32) * jnp.maximum(hi - lo, 0.0)
        cur = jnp.where(eq, neg, cur)                                   # mask all copies
        return cur, taken + cnt, acc

    zeros = jnp.zeros((TN, 1), jnp.float32)
    _, _, acc = lax.fori_loop(0, end, body, (cur0, zeros, zeros), unroll=end <= 8)
    xm_rows = acc * (1.0 / float(end - start))                          # (TN, 1) f32

    # ---- reduce this tile to four scalars (valid rows only) ----
    ce_t = jnp.sum(jnp.where(valid, ce_rows, 0.0), keepdims=True)       # (1,1)
    s_t = jnp.sum(jnp.where(valid, xm_rows, 0.0), keepdims=True)        # (1,1)
    xm_m = jnp.where(valid, xm_rows, _NEG)
    m_t = jnp.max(xm_m, keepdims=True)                                  # (1,1)
    l_t = jnp.sum(jnp.where(valid, jnp.exp(xm_m - m_t), 0.0), keepdims=True)

    # ---- online-softmax merge into persistent O(1) accumulators ----
    @pl.when(t == 0)
    def _():
        ce_acc[...] = jnp.zeros((1, 1), jnp.float32)
        s_acc[...] = jnp.zeros((1, 1), jnp.float32)
        l_acc[...] = jnp.zeros((1, 1), jnp.float32)
        m_acc[...] = jnp.full((1, 1), _NEG, jnp.float32)

    m_old = m_acc[...]
    l_old = l_acc[...]
    m_new = jnp.maximum(m_old, m_t)
    l_new = l_old * jnp.exp(m_old - m_new) + l_t * jnp.exp(m_t - m_new)
    ce_new = ce_acc[...] + ce_t
    s_new = s_acc[...] + s_t
    m_acc[...] = m_new
    l_acc[...] = l_new
    ce_acc[...] = ce_new
    s_acc[...] = s_new

    # ---- finalize on the last tile: batch-dim log-softmax + weighted sum ----
    @pl.when(t == pl.num_programs(0) - 1)
    def _():
        nv = float(n_valid)
        ce_mean = ce_new * (1.0 / nv)
        lse0 = jnp.log(l_new) + m_new                  # lse over the batch of x_mean
        xterm = nv * lse0 - s_new                      # -sum(log_softmax(x_mean, dim=0))
        out_ref[...] = a * ce_mean + b * xterm         # (1,1) store, epilogue only


def drsl3_loss(pred, labels, a=1.0, b=0.001, start=0, end=4, batch_tile=None):
    pred = jnp.asarray(pred)
    labels = jnp.asarray(labels)
    N, C = pred.shape
    if not (0 <= start < end):
        raise ValueError("need 0 <= start < end")
    if end > C - 1:
        raise ValueError("need end <= num_classes - 1 (slice runs over non-label logits)")

    itemsize = jnp.dtype(pred.dtype).itemsize
    if batch_tile is None:
        # Target ~2 MiB of pred per grid step (double-buffered -> ~4 MiB), capped at 1024 rows.
        rows = (2 << 20) // max(1, C * itemsize)
        rows = max(8, min(1024, rows))
    else:
        rows = max(1, int(batch_tile))
    rows = _round_up(rows, 8)
    tn = N if rows >= N else rows                      # full-dim block or multiple of 8
    grid = pl.cdiv(N, tn)                              # ragged last tile handled in-kernel

    labels2d = labels.astype(jnp.int32).reshape(N, 1)  # tiny per-tile DMA; kept tiled

    kernel = functools.partial(
        _drsl3_kernel, a=float(a), b=float(b), start=int(start), end=int(end),
        n_valid=int(N))

    tile_bytes = tn * C * itemsize
    vmem_limit = int(min(64 << 20, max(8 << 20, 2 * tile_bytes + (2 << 20))))

    out = pl.pallas_call(
        kernel,
        out_shape=jax.ShapeDtypeStruct((1, 1), jnp.float32),
        grid=(grid,),
        in_specs=[
            pl.BlockSpec((tn, C), lambda t: (t, 0)),   # pred streamed in native dtype
            pl.BlockSpec((tn, 1), lambda t: (t, 0)),   # labels column
        ],
        out_specs=pl.BlockSpec((1, 1), lambda t: (0, 0)),
        scratch_shapes=[
            pltpu.VMEM((1, 1), jnp.float32),           # running CE sum
            pltpu.VMEM((1, 1), jnp.float32),           # running max m of x_mean
            pltpu.VMEM((1, 1), jnp.float32),           # running sum-exp l of x_mean
            pltpu.VMEM((1, 1), jnp.float32),           # running sum of x_mean
        ],
        compiler_params=pltpu.CompilerParams(
            dimension_semantics=("arbitrary",),        # sequential accumulate + finalize
            vmem_limit_bytes=vmem_limit),
    )(pred, labels2d)
    return out[0, 0]


def _drsl3_ref(pred, labels, a=1.0, b=0.001, start=0, end=4):
    """Pure-JAX reference mirroring the PyTorch module."""
    N, C = pred.shape
    logp = jax.nn.log_softmax(pred, axis=1)
    ce = -jnp.mean(logp[jnp.arange(N), labels])
    onehot = jax.nn.one_hot(labels, C, dtype=jnp.bool_)
    no_pred = pred[~onehot].reshape(N, C - 1)
    sorted_desc = -jnp.sort(-no_pred, axis=1)
    x_mean = jnp.mean(sorted_desc[:, start:end], axis=1, keepdims=True)
    x = -jnp.sum(jax.nn.log_softmax(x_mean, axis=0))
    return a * ce + b * x


if __name__ == "__main__":
    key = jax.random.PRNGKey(0)
    k1, k2, k3, k4 = jax.random.split(key, 4)

    # Case 1: single-tile path (batch=8, classes=8, C-1 >= end=4 as the module requires).
    N, C = 8, 8
    pred = jax.random.normal(k1, (N, C), dtype=jnp.float32)
    labels = jax.random.randint(k2, (N,), 0, C, dtype=jnp.int32)
    loss = jax.block_until_ready(drsl3_loss(pred, labels, a=1.0, b=0.001, start=0, end=4))
    ref = _drsl3_ref(pred, labels, a=1.0, b=0.001, start=0, end=4)
    assert jnp.allclose(loss, ref, rtol=1e-5, atol=1e-5), (loss, ref)

    # Case 2: multi-tile grid with a ragged last batch tile, online merge, nonzero start.
    N2, C2 = 20, 10
    pred2 = jax.random.normal(k3, (N2, C2), dtype=jnp.float32)
    labels2 = jax.random.randint(k4, (N2,), 0, C2, dtype=jnp.int32)
    loss2 = jax.block_until_ready(
        drsl3_loss(pred2, labels2, a=1.0, b=0.001, start=1, end=5, batch_tile=8))
    ref2 = _drsl3_ref(pred2, labels2, a=1.0, b=0.001, start=1, end=5)
    assert jnp.allclose(loss2, ref2, rtol=1e-5, atol=1e-5), (loss2, ref2)

    print("KERNEL_OK")
</pallas_src>

<mosaic_0001>
module attributes {stable_mosaic.version = 11 : i64} {
  func.func @_drsl3_kernel(%arg0: i32, %arg1: memref<8x8xf32, #tpu.memory_space<vmem>>, %arg2: memref<8x1xi32, #tpu.memory_space<vmem>>, %arg3: memref<1x1xf32, #tpu.memory_space<vmem>>, %arg4: memref<1x1xf32, #tpu.memory_space<vmem>>, %arg5: memref<1x1xf32, #tpu.memory_space<vmem>>, %arg6: memref<1x1xf32, #tpu.memory_space<vmem>>, %arg7: memref<1x1xf32, #tpu.memory_space<vmem>>) attributes {dimension_semantics = [#tpu.dimension_semantics<arbitrary>], iteration_bounds = array<i64: 1>, scalar_prefetch = 0 : i64, scratch_operands = 4 : i64, tpu.core_type = #tpu.core_type<tc>, window_params = [{transform_indices = @transform_0, window_bounds = array<i64: 8, 8>}, {transform_indices = @transform_1, window_bounds = array<i64: 8, 1>}, {pipeline_mode = #tpu.pipeline_mode<synchronous>, transform_indices = @transform_2, window_bounds = array<i64: 1, 1>}]} {
    %c0 = arith.constant 0 : index
    %c0_0 = arith.constant 0 : index
    %0 = vector.load %arg1[%c0, %c0_0] : memref<8x8xf32, #tpu.memory_space<vmem>>, vector<8x8xf32>
    %c0_1 = arith.constant 0 : index
    %c0_2 = arith.constant 0 : index
    %1 = vector.load %arg2[%c0_1, %c0_2] : memref<8x1xi32, #tpu.memory_space<vmem>>, vector<8x1xi32>
    %c8_i32 = arith.constant 8 : i32
    %2 = arith.muli %arg0, %c8_i32 : i32
    %c8_i32_3 = arith.constant 8 : i32
    %3 = arith.subi %c8_i32_3, %2 : i32
    %4 = tpu.iota {dimensions = array<i32: 0>} : vector<8x1xi32>
    %5 = vector.broadcast %3 : i32 to vector<8x1xi32>
    %6 = arith.cmpi slt, %4, %5 : vector<8x1xi32>
    %7 = tpu.iota {dimensions = array<i32: 1>} : vector<8x8xi32>
    %8 = vector.broadcast %1 : vector<8x1xi32> to vector<8x8xi32>
    %9 = arith.cmpi eq, %7, %8 : vector<8x8xi32>
    %cst = arith.constant dense<0xFF800000> : vector<8xf32>
    %10 = vector.multi_reduction <maximumf>, %0, %cst [1] : vector<8x8xf32> to vector<8xf32>
    %11 = vector.shape_cast %10 : vector<8xf32> to vector<8x1xf32>
    %12 = vector.broadcast %11 : vector<8x1xf32> to vector<8x8xf32>
    %13 = arith.subf %0, %12 : vector<8x8xf32>
    %14 = math.exp %13 : vector<8x8xf32>
    %cst_4 = arith.constant dense<0.000000e+00> : vector<8xf32>
    %15 = vector.multi_reduction <add>, %14, %cst_4 [1] : vector<8x8xf32> to vector<8xf32>
    %16 = vector.shape_cast %15 : vector<8xf32> to vector<8x1xf32>
    %17 = math.log %16 : vector<8x1xf32>
    %18 = arith.addf %17, %11 : vector<8x1xf32>
    %cst_5 = arith.constant 0.000000e+00 : f32
    %19 = vector.broadcast %cst_5 : f32 to vector<8x8xf32>
    %20 = arith.select %9, %0, %19 : vector<8x8xi1>, vector<8x8xf32>
    %cst_6 = arith.constant dense<0.000000e+00> : vector<8xf32>
    %21 = vector.multi_reduction <add>, %20, %cst_6 [1] : vector<8x8xf32> to vector<8xf32>
    %22 = vector.shape_cast %21 : vector<8xf32> to vector<8x1xf32>
    %23 = arith.subf %18, %22 : vector<8x1xf32>
    %cst_7 = arith.constant -1.000000e+30 : f32
    %24 = vector.broadcast %cst_7 : f32 to vector<8x8xf32>
    %25 = arith.select %9, %24, %0 : vector<8x8xi1>, vector<8x8xf32>
    %cst_8 = arith.constant 0.000000e+00 : f32
    %26 = vector.broadcast %cst_8 : f32 to vector<8x1xf32>
    %cst_9 = arith.constant -1.000000e+30 : f32
    %c0_i32 = arith.constant 0 : i32
    %cst_10 = arith.constant dense<0xFF800000> : vector<8xf32>
    %27 = vector.multi_reduction <maximumf>, %25, %cst_10 [1] : vector<8x8xf32> to vector<8xf32>
    %28 = vector.shape_cast %27 : vector<8xf32> to vector<8x1xf32>
    %29 = vector.broadcast %28 : vector<8x1xf32> to vector<8x8xf32>
    %30 = arith.cmpf oeq, %25, %29 : vector<8x8xf32>
    %31 = arith.extui %30 : vector<8x8xi1> to vector<8x8xi32>
    %32 = arith.sitofp %31 : vector<8x8xi32> to vector<8x8xf32>
    %cst_11 = arith.constant dense<0.000000e+00> : vector<8xf32>
    %33 = vector.multi_reduction <add>, %32, %cst_11 [1] : vector<8x8xf32> to vector<8xf32>
    %34 = vector.shape_cast %33 : vector<8xf32> to vector<8x1xf32>
    %cst_12 = arith.constant 0.000000e+00 : f32
    %35 = vector.broadcast %cst_12 : f32 to vector<8x1xf32>
    %36 = arith.maximumf %26, %35 : vector<8x1xf32>
    %37 = arith.addf %26, %34 : vector<8x1xf32>
    %cst_13 = arith.constant 4.000000e+00 : f32
    %38 = vector.broadcast %cst_13 : f32 to vector<8x1xf32>
    %39 = arith.minimumf %37, %38 : vector<8x1xf32>
    %40 = arith.subf %39, %36 : vector<8x1xf32>
    %cst_14 = arith.constant 0.000000e+00 : f32
    %41 = vector.broadcast %cst_14 : f32 to vector<8x1xf32>
    %42 = arith.maximumf %40, %41 : vector<8x1xf32>
    %43 = arith.mulf %28, %42 : vector<8x1xf32>
    %44 = arith.addf %26, %43 : vector<8x1xf32>
    %45 = vector.broadcast %cst_9 : f32 to vector<8x8xf32>
    %46 = arith.select %30, %45, %25 : vector<8x8xi1>, vector<8x8xf32>
    %47 = arith.addf %26, %34 : vector<8x1xf32>
    %c1_i32 = arith.constant 1 : i32
    %cst_15 = arith.constant dense<0xFF800000> : vector<8xf32>
    %48 = vector.multi_reduction <maximumf>, %46, %cst_15 [1] : vector<8x8xf32> to vector<8xf32>
    %49 = vector.shape_cast %48 : vector<8xf32> to vector<8x1xf32>
    %50 = vector.broadcast %49 : vector<8x1xf32> to vector<8x8xf32>
    %51 = arith.cmpf oeq, %46, %50 : vector<8x8xf32>
    %52 = arith.extui %51 : vector<8x8xi1> to vector<8x8xi32>
    %53 = arith.sitofp %52 : vector<8x8xi32> to vector<8x8xf32>
    %cst_16 = arith.constant dense<0.000000e+00> : vector<8xf32>
    %54 = vector.multi_reduction <add>, %53, %cst_16 [1] : vector<8x8xf32> to vector<8xf32>
    %55 = vector.shape_cast %54 : vector<8xf32> to vector<8x1xf32>
    %cst_17 = arith.constant 0.000000e+00 : f32
    %56 = vector.broadcast %cst_17 : f32 to vector<8x1xf32>
    %57 = arith.maximumf %47, %56 : vector<8x1xf32>
    %58 = arith.addf %47, %55 : vector<8x1xf32>
    %cst_18 = arith.constant 4.000000e+00 : f32
    %59 = vector.broadcast %cst_18 : f32 to vector<8x1xf32>
    %60 = arith.minimumf %58, %59 : vector<8x1xf32>
    %61 = arith.subf %60, %57 : vector<8x1xf32>
    %cst_19 = arith.constant 0.000000e+00 : f32
    %62 = vector.broadcast %cst_19 : f32 to vector<8x1xf32>
    %63 = arith.maximumf %61, %62 : vector<8x1xf32>
    %64 = arith.mulf %49, %63 : vector<8x1xf32>
    %65 = arith.addf %44, %64 : vector<8x1xf32>
    %66 = vector.broadcast %cst_9 : f32 to vector<8x8xf32>
    %67 = arith.select %51, %66, %46 : vector<8x8xi1>, vector<8x8xf32>
    %68 = arith.addf %47, %55 : vector<8x1xf32>
    %c2_i32 = arith.constant 2 : i32
    %cst_20 = arith.constant dense<0xFF800000> : vector<8xf32>
    %69 = vector.multi_reduction <maximumf>, %67, %cst_20 [1] : vector<8x8xf32> to vector<8xf32>
    %70 = vector.shape_cast %69 : vector<8xf32> to vector<8x1xf32>
    %71 = vector.broadcast %70 : vector<8x1xf32> to vector<8x8xf32>
    %72 = arith.cmpf oeq, %67, %71 : vector<8x8xf32>
    %73 = arith.extui %72 : vector<8x8xi1> to vector<8x8xi32>
    %74 = arith.sitofp %73 : vector<8x8xi32> to vector<8x8xf32>
    %cst_21 = arith.constant dense<0.000000e+00> : vector<8xf32>
    %75 = vector.multi_reduction <add>, %74, %cst_21 [1] : vector<8x8xf32> to vector<8xf32>
    %76 = vector.shape_cast %75 : vector<8xf32> to vector<8x1xf32>
    %cst_22 = arith.constant 0.000000e+00 : f32
    %77 = vector.broadcast %cst_22 : f32 to vector<8x1xf32>
    %78 = arith.maximumf %68, %77 : vector<8x1xf32>
    %79 = arith.addf %68, %76 : vector<8x1xf32>
    %cst_23 = arith.constant 4.000000e+00 : f32
    %80 = vector.broadcast %cst_23 : f32 to vector<8x1xf32>
    %81 = arith.minimumf %79, %80 : vector<8x1xf32>
    %82 = arith.subf %81, %78 : vector<8x1xf32>
    %cst_24 = arith.constant 0.000000e+00 : f32
    %83 = vector.broadcast %cst_24 : f32 to vector<8x1xf32>
    %84 = arith.maximumf %82, %83 : vector<8x1xf32>
    %85 = arith.mulf %70, %84 : vector<8x1xf32>
    %86 = arith.addf %65, %85 : vector<8x1xf32>
    %87 = vector.broadcast %cst_9 : f32 to vector<8x8xf32>
    %88 = arith.select %72, %87, %67 : vector<8x8xi1>, vector<8x8xf32>
    %89 = arith.addf %68, %76 : vector<8x1xf32>
    %c3_i32 = arith.constant 3 : i32
    %cst_25 = arith.constant dense<0xFF800000> : vector<8xf32>
    %90 = vector.multi_reduction <maximumf>, %88, %cst_25 [1] : vector<8x8xf32> to vector<8xf32>
    %91 = vector.shape_cast %90 : vector<8xf32> to vector<8x1xf32>
    %92 = vector.broadcast %91 : vector<8x1xf32> to vector<8x8xf32>
    %93 = arith.cmpf oeq, %88, %92 : vector<8x8xf32>
    %94 = arith.extui %93 : vector<8x8xi1> to vector<8x8xi32>
    %95 = arith.sitofp %94 : vector<8x8xi32> to vector<8x8xf32>
    %cst_26 = arith.constant dense<0.000000e+00> : vector<8xf32>
    %96 = vector.multi_reduction <add>, %95, %cst_26 [1] : vector<8x8xf32> to vector<8xf32>
    %97 = vector.shape_cast %96 : vector<8xf32> to vector<8x1xf32>
    %cst_27 = arith.constant 0.000000e+00 : f32
    %98 = vector.broadcast %cst_27 : f32 to vector<8x1xf32>
    %99 = arith.maximumf %89, %98 : vector<8x1xf32>
    %100 = arith.addf %89, %97 : vector<8x1xf32>
    %cst_28 = arith.constant 4.000000e+00 : f32
    %101 = vector.broadcast %cst_28 : f32 to vector<8x1xf32>
    %102 = arith.minimumf %100, %101 : vector<8x1xf32>
    %103 = arith.subf %102, %99 : vector<8x1xf32>
    %cst_29 = arith.constant 0.000000e+00 : f32
    %104 = vector.broadcast %cst_29 : f32 to vector<8x1xf32>
    %105 = arith.maximumf %103, %104 : vector<8x1xf32>
    %106 = arith.mulf %91, %105 : vector<8x1xf32>
    %107 = arith.addf %86, %106 : vector<8x1xf32>
    %108 = vector.broadcast %cst_9 : f32 to vector<8x8xf32>
    %109 = arith.select %93, %108, %88 : vector<8x8xi1>, vector<8x8xf32>
    %110 = arith.addf %89, %97 : vector<8x1xf32>
    %cst_30 = arith.constant 2.500000e-01 : f32
    %111 = vector.broadcast %cst_30 : f32 to vector<8x1xf32>
    %112 = arith.mulf %107, %111 : vector<8x1xf32>
    %cst_31 = arith.constant 0.000000e+00 : f32
    %113 = vector.broadcast %cst_31 : f32 to vector<8x1xf32>
    %114 = arith.select %6, %23, %113 : vector<8x1xi1>, vector<8x1xf32>
    %115 = vector.shape_cast %114 : vector<8x1xf32> to vector<1x8x1xf32>
    %cst_32 = arith.constant dense<0.000000e+00> : vector<1xf32>
    %116 = vector.multi_reduction <add>, %115, %cst_32 [1, 2] : vector<1x8x1xf32> to vector<1xf32>
    %117 = vector.shape_cast %116 : vector<1xf32> to vector<1x1x1xf32>
    %118 = vector.extract %117[0, 0, 0] : f32 from vector<1x1x1xf32>
    %119 = vector.broadcast %118 : f32 to vector<1x1xf32>
    %cst_33 = arith.constant 0.000000e+00 : f32
    %120 = vector.broadcast %cst_33 : f32 to vector<8x1xf32>
    %121 = arith.select %6, %112, %120 : vector<8x1xi1>, vector<8x1xf32>
    %122 = vector.shape_cast %121 : vector<8x1xf32> to vector<1x8x1xf32>
    %cst_34 = arith.constant dense<0.000000e+00> : vector<1xf32>
    %123 = vector.multi_reduction <add>, %122, %cst_34 [1, 2] : vector<1x8x1xf32> to vector<1xf32>
    %124 = vector.shape_cast %123 : vector<1xf32> to vector<1x1x1xf32>
    %125 = vector.extract %124[0, 0, 0] : f32 from vector<1x1x1xf32>
    %126 = vector.broadcast %125 : f32 to vector<1x1xf32>
    %cst_35 = arith.constant -1.000000e+30 : f32
    %127 = vector.broadcast %cst_35 : f32 to vector<8x1xf32>
    %128 = arith.select %6, %112, %127 : vector<8x1xi1>, vector<8x1xf32>
    %129 = vector.shape_cast %128 : vector<8x1xf32> to vector<1x8x1xf32>
    %cst_36 = arith.constant dense<0xFF800000> : vector<1xf32>
    %130 = vector.multi_reduction <maximumf>, %129, %cst_36 [1, 2] : vector<1x8x1xf32> to vector<1xf32>
    %131 = vector.shape_cast %130 : vector<1xf32> to vector<1x1x1xf32>
    %132 = vector.extract %131[0, 0, 0] : f32 from vector<1x1x1xf32>
    %133 = vector.broadcast %132 : f32 to vector<1x1xf32>
    %134 = vector.broadcast %133 : vector<1x1xf32> to vector<8x1xf32>
    %135 = arith.subf %128, %134 : vector<8x1xf32>
    %136 = math.exp %135 : vector<8x1xf32>
    %cst_37 = arith.constant 0.000000e+00 : f32
    %137 = vector.broadcast %cst_37 : f32 to vector<8x1xf32>
    %138 = arith.select %6, %136, %137 : vector<8x1xi1>, vector<8x1xf32>
    %139 = vector.shape_cast %138 : vector<8x1xf32> to vector<1x8x1xf32>
    %cst_38 = arith.constant dense<0.000000e+00> : vector<1xf32>
    %140 = vector.multi_reduction <add>, %139, %cst_38 [1, 2] : vector<1x8x1xf32> to vector<1xf32>
    %141 = vector.shape_cast %140 : vector<1xf32> to vector<1x1x1xf32>
    %142 = vector.extract %141[0, 0, 0] : f32 from vector<1x1x1xf32>
    %143 = vector.broadcast %142 : f32 to vector<1x1xf32>
    %c0_i32_39 = arith.constant 0 : i32
    %144 = arith.cmpi eq, %arg0, %c0_i32_39 : i32
    %145 = arith.extui %144 : i1 to i32
    %c0_i32_40 = arith.constant 0 : i32
    %146 = arith.cmpi ne, %145, %c0_i32_40 : i32
    scf.if %146 {
      %cst_59 = arith.constant 0.000000e+00 : f32
      %168 = vector.broadcast %cst_59 : f32 to vector<1x1xf32>
      %c0_60 = arith.constant 0 : index
      %c0_61 = arith.constant 0 : index
      %169 = vector.load %arg4[%c0_60, %c0_61] : memref<1x1xf32, #tpu.memory_space<vmem>>, vector<1x1xf32>
      tpu.vector_store %arg4[%c0_60, %c0_61], %168 {strides = array<i32>} : memref<1x1xf32, #tpu.memory_space<vmem>>, vector<1x1xf32>,
      %cst_62 = arith.constant 0.000000e+00 : f32
      %170 = vector.broadcast %cst_62 : f32 to vector<1x1xf32>
      %c0_63 = arith.constant 0 : index
      %c0_64 = arith.constant 0 : index
      %171 = vector.load %arg7[%c0_63, %c0_64] : memref<1x1xf32, #tpu.memory_space<vmem>>, vector<1x1xf32>
      tpu.vector_store %arg7[%c0_63, %c0_64], %170 {strides = array<i32>} : memref<1x1xf32, #tpu.memory_space<vmem>>, vector<1x1xf32>,
      %cst_65 = arith.constant 0.000000e+00 : f32
      %172 = vector.broadcast %cst_65 : f32 to vector<1x1xf32>
      %c0_66 = arith.constant 0 : index
      %c0_67 = arith.constant 0 : index
      %173 = vector.load %arg6[%c0_66, %c0_67] : memref<1x1xf32, #tpu.memory_space<vmem>>, vector<1x1xf32>
      tpu.vector_store %arg6[%c0_66, %c0_67], %172 {strides = array<i32>} : memref<1x1xf32, #tpu.memory_space<vmem>>, vector<1x1xf32>,
      %cst_68 = arith.constant -1.000000e+30 : f32
      %174 = vector.broadcast %cst_68 : f32 to vector<1x1xf32>
      %c0_69 = arith.constant 0 : index
      %c0_70 = arith.constant 0 : index
      %175 = vector.load %arg5[%c0_69, %c0_70] : memref<1x1xf32, #tpu.memory_space<vmem>>, vector<1x1xf32>
      tpu.vector_store %arg5[%c0_69, %c0_70], %174 {strides = array<i32>} : memref<1x1xf32, #tpu.memory_space<vmem>>, vector<1x1xf32>,
    } else {
    }
    %c0_41 = arith.constant 0 : index
    %c0_42 = arith.constant 0 : index
    %147 = vector.load %arg5[%c0_41, %c0_42] : memref<1x1xf32, #tpu.memory_space<vmem>>, vector<1x1xf32>
    %c0_43 = arith.constant 0 : index
    %c0_44 = arith.constant 0 : index
    %148 = vector.load %arg6[%c0_43, %c0_44] : memref<1x1xf32, #tpu.memory_space<vmem>>, vector<1x1xf32>
    %149 = arith.maximumf %147, %133 : vector<1x1xf32>
    %150 = arith.subf %147, %149 : vector<1x1xf32>
    %151 = math.exp %150 : vector<1x1xf32>
    %152 = arith.mulf %148, %151 : vector<1x1xf32>
    %153 = arith.subf %133, %149 : vector<1x1xf32>
    %154 = math.exp %153 : vector<1x1xf32>
    %155 = arith.mulf %143, %154 : vector<1x1xf32>
    %156 = arith.addf %152, %155 : vector<1x1xf32>
    %c0_45 = arith.constant 0 : index
    %c0_46 = arith.constant 0 : index
    %157 = vector.load %arg4[%c0_45, %c0_46] : memref<1x1xf32, #tpu.memory_space<vmem>>, vector<1x1xf32>
    %158 = arith.addf %157, %119 : vector<1x1xf32>
    %c0_47 = arith.constant 0 : index
    %c0_48 = arith.constant 0 : index
    %159 = vector.load %arg7[%c0_47, %c0_48] : memref<1x1xf32, #tpu.memory_space<vmem>>, vector<1x1xf32>
    %160 = arith.addf %159, %126 : vector<1x1xf32>
    %c0_49 = arith.constant 0 : index
    %c0_50 = arith.constant 0 : index
    %161 = vector.load %arg5[%c0_49, %c0_50] : memref<1x1xf32, #tpu.memory_space<vmem>>, vector<1x1xf32>
    tpu.vector_store %arg5[%c0_49, %c0_50], %149 {strides = array<i32>} : memref<1x1xf32, #tpu.memory_space<vmem>>, vector<1x1xf32>,
    %c0_51 = arith.constant 0 : index
    %c0_52 = arith.constant 0 : index
    %162 = vector.load %arg6[%c0_51, %c0_52] : memref<1x1xf32, #tpu.memory_space<vmem>>, vector<1x1xf32>
    tpu.vector_store %arg6[%c0_51, %c0_52], %156 {strides = array<i32>} : memref<1x1xf32, #tpu.memory_space<vmem>>, vector<1x1xf32>,
    %c0_53 = arith.constant 0 : index
    %c0_54 = arith.constant 0 : index
    %163 = vector.load %arg4[%c0_53, %c0_54] : memref<1x1xf32, #tpu.memory_space<vmem>>, vector<1x1xf32>
    tpu.vector_store %arg4[%c0_53, %c0_54], %158 {strides = array<i32>} : memref<1x1xf32, #tpu.memory_space<vmem>>, vector<1x1xf32>,
    %c0_55 = arith.constant 0 : index
    %c0_56 = arith.constant 0 : index
    %164 = vector.load %arg7[%c0_55, %c0_56] : memref<1x1xf32, #tpu.memory_space<vmem>>, vector<1x1xf32>
    tpu.vector_store %arg7[%c0_55, %c0_56], %160 {strides = array<i32>} : memref<1x1xf32, #tpu.memory_space<vmem>>, vector<1x1xf32>,
    %c0_i32_57 = arith.constant 0 : i32
    %165 = arith.cmpi eq, %arg0, %c0_i32_57 : i32
    %166 = arith.extui %165 : i1 to i32
    %c0_i32_58 = arith.constant 0 : i32
    %167 = arith.cmpi ne, %166, %c0_i32_58 : i32
    scf.if %167 {
      %cst_59 = arith.constant 1.250000e-01 : f32
      %168 = vector.broadcast %cst_59 : f32 to vector<1x1xf32>
      %169 = arith.mulf %158, %168 : vector<1x1xf32>
      %170 = math.log %156 : vector<1x1xf32>
      %171 = arith.addf %170, %149 : vector<1x1xf32>
      %cst_60 = arith.constant 8.000000e+00 : f32
      %172 = vector.broadcast %cst_60 : f32 to vector<1x1xf32>
      %173 = arith.mulf %172, %171 : vector<1x1xf32>
      %174 = arith.subf %173, %160 : vector<1x1xf32>
      %cst_61 = arith.constant 1.000000e+00 : f32
      %175 = vector.broadcast %cst_61 : f32 to vector<1x1xf32>
      %176 = arith.mulf %175, %169 : vector<1x1xf32>
      %cst_62 = arith.constant 1.000000e-03 : f32
      %177 = vector.broadcast %cst_62 : f32 to vector<1x1xf32>
      %178 = arith.mulf %177, %174 : vector<1x1xf32>
      %179 = arith.addf %176, %178 : vector<1x1xf32>
      %c0_63 = arith.constant 0 : index
      %c0_64 = arith.constant 0 : index
      %180 = vector.load %arg3[%c0_63, %c0_64] : memref<1x1xf32, #tpu.memory_space<vmem>>, vector<1x1xf32>
      tpu.vector_store %arg3[%c0_63, %c0_64], %179 {strides = array<i32>} : memref<1x1xf32, #tpu.memory_space<vmem>>, vector<1x1xf32>,
    } else {
    }
    return
  }
  func.func @transform_0(%arg0: i32) -> (i32, i32) {
    %c0_i32 = arith.constant 0 : i32
    %c0_i32_0 = arith.constant 0 : i32
    return %arg0, %c0_i32 : i32, i32
  }
  func.func @transform_1(%arg0: i32) -> (i32, i32) {
    %c0_i32 = arith.constant 0 : i32
    %c0_i32_0 = arith.constant 0 : i32
    return %arg0, %c0_i32 : i32, i32
  }
  func.func @transform_2(%arg0: i32) -> (i32, i32) {
    %c0_i32 = arith.constant 0 : i32
    %c0_i32_0 = arith.constant 0 : i32
    %c0_i32_1 = arith.constant 0 : i32
    return %c0_i32, %c0_i32_0 : i32, i32
  }
}

</mosaic_0001>

<bundles_post_ra>
// kernel: tpu_custom_call.1
= control target key start
LH: loop header
LB: loop body
LE: loop exit
PB: predicated region body
PF: predicated region fallthrough
CT: control target
= control target key end

     0   :  { %s339_s0 = inlined_call_operand.vmem [shape: f32[8,8], index: 0, kind: input, shape index: {}]   ;;  %s340_s1 = inlined_call_operand.vmem [shape: s32[8,1], index: 1, kind: input, shape index: {}]   ;;  %s341_s2 = inlined_call_operand.hbm [shape: f32[1,1], index: 2, kind: output, shape index: {}]  }
   0x1   :  { %v13_v0 = vld [vmem:[%s340_s1] sm:$0xff] }
   0x2   :  { %7 = vsyncpa [#allocation7], 0  ;;  %v273_v1 = vmov 0   ;;  %v20_v2 = vlaneseq  ;;  %v12_v4 = vld [vmem:[%s339_s0] sm:$0xff]  ;;  %vm26_vm0 = vcmask 64512   ;;  %v274_v15 = vmov 0.0  }
   0x3   :  { %234 = vset.pattern.permute.xlu0 %v273_v1  ;;  %v27_v11 = vsel %vm26_vm0, %v12_v4, -inf  ;;  %vm112_vm6 = vcmask 7168   ;;  %vm164_vm7 = vcmask 0   ;;  %s276_s15 = smov [#allocation6]   ;;  %s209_s19 = sshll.u32 %s341_s2, 4  ;;  %s210_s19 = int_to_ptr.hbm [resolvable:$true] %s209_s19 }
   0x4   :  { %23 = vperm.xlu0 %234, %v13_v0   ;;  %v21_v3 = vand.u32 127, %v20_v2  ;;  %28 = vmax.xlane.f32.xlu2 %v27_v11  ;;  %165 = vst.msk [vmem:[#allocation2] sm:$0x1] %vm164_vm7, %v274_v15  ;;  %s207_s16 = sshll.u32 %s276_s15, 4  ;;  %s208_s16 = int_to_ptr.vmem [resolvable:$true] %s207_s16 }
   0x5   :  { %166 = vst.msk [vmem:[#allocation5] sm:$0x1] %vm164_vm7, %v274_v15 }
   0x6   :  { %167 = vst.msk [vmem:[#allocation4] sm:$0x1] %vm164_vm7, %v274_v15 }
  0x76   :  { %v24_v5 = vpop.permute.xlu0 %23 }
  0x77   :  { %vm25_vm1 = vcmp.eq.s32.totalorder %v21_v3, %v24_v5  ;;  %v29_v18 = vpop.xlane.xlu2 %28 }
  0x78   :  { %v44_v6 = vsel %vm25_vm1, -1e+30, %v12_v4  ;;  %v30_v19 = vsub.f32 %v12_v4, %v29_v18  ;;  %v39_v33 = vsel %vm25_vm1, %v12_v4, 0.0 }
  0x79   :  { %v45_v7 = vsel %vm26_vm0, %v44_v6, -inf  ;;  %v40_v34 = vsel %vm26_vm0, %v39_v33, 0.0  ;;  %v183_v33 = vld [vmem:[#allocation5] sm:$0x1] }
  0x7a   :  { %46 = vmax.xlane.f32.xlu0 %v45_v7  ;;  %v31_v20 = vmul.f32 1.442695, %v30_v19 }
  0x7c   :  { %235 = vpow2.f32 %v31_v20 }
  0x82   :  { %v236_v26 = vpop.eup %235 }
  0x83   :  { %v33_v28 = vsel %vm26_vm0, %v236_v26, 0.0 }
  0xed   :  { %v300_v8 = vpop.xlane.xlu0 %46 }
  0xee   :  { %vm48_vm2 = vcmp.eq.f32.partialorder %v44_v6, %v300_v8 }
  0xef   :  { %v59_v9 = vsel %vm48_vm2, -1e+30, %v44_v6  ;;  %v218_v16 = vsel %vm48_vm2, 1.0, %v274_v15 }
  0xf0   :  { %v60_v10 = vsel %vm26_vm0, %v59_v9, -inf  ;;  %v51_v17 = vsel %vm26_vm0, %v218_v16, 0.0 }
  0xf1   :  { %61 = vmax.xlane.f32.xlu1 %v60_v10 }
 0x164   :  { %v62_v12 = vpop.xlane.xlu1 %61 }
 0x165   :  { %vm63_vm3 = vcmp.eq.f32.partialorder %v59_v9, %v62_v12 }
 0x166   :  { %v76_v13 = vsel %vm63_vm3, -1e+30, %v59_v9  ;;  %v219_v27 = vsel %vm63_vm3, 1.0, %v274_v15 }
 0x167   :  { %v77_v14 = vsel %vm26_vm0, %v76_v13, -inf  ;;  %v66_v29 = vsel %vm26_vm0, %v219_v27, 0.0 }
 0x168   :  { %78 = vmax.xlane.f32.xlu1 %v77_v14 }
 0x170   :  { %52 = vadd.xlane.f32.xlu1 %v51_v17 }
 0x1db   :  { %v79_v21 = vpop.xlane.xlu1 %78 }
 0x1dc   :  { %vm80_vm4 = vcmp.eq.f32.partialorder %v76_v13, %v79_v21 }
 0x1dd   :  { %v220_v22 = vsel %vm80_vm4, 1.0, %v274_v15  ;;  %v93_v23 = vsel %vm80_vm4, -1e+30, %v76_v13 }
 0x1de   :  { %v83_v24 = vsel %vm26_vm0, %v220_v22, 0.0  ;;  %v94_v25 = vsel %vm26_vm0, %v93_v23, -inf }
 0x1df   :  { %84 = vadd.xlane.f32.xlu1 %v83_v24  ;;  %95 = vmax.xlane.f32.xlu2 %v94_v25 }
 0x1e3   :  { %v53_v35 = vpop.xlane.xlu1 %52 }
 0x1e4   :  { %v69_v41 = vmax.f32 %v53_v35, 0.0  ;;  %v55_v45 = vmin.f32 %v53_v35, 4.0 }
 0x1e6   :  { %v56_v49 = vmax.f32 %v55_v45, 0.0 }
 0x1e7   :  { %67 = vadd.xlane.f32.xlu2 %v66_v29  ;;  %34 = vadd.xlane.f32.xlu1 %v33_v28  ;;  %v275_v29 = vmov -1e+30  }
 0x1e8   :  { %v57_v55 = vmul.f32 %v56_v49, %v300_v8  ;;  %168 = vst.msk [vmem:[#allocation3] sm:$0x1] %vm164_vm7, %v275_v29 }
 0x252   :  { %v96_v30 = vpop.xlane.xlu2 %95  ;;  %v85_v36 = vpop.xlane.xlu1 %84 }
 0x253   :  { %vm97_vm5 = vcmp.eq.f32.partialorder %v93_v23, %v96_v30 }
 0x254   :  { %v221_v31 = vsel %vm97_vm5, 1.0, %v274_v15 }
 0x255   :  { %v100_v32 = vsel %vm26_vm0, %v221_v31, 0.0 }
 0x256   :  { %101 = vadd.xlane.f32.xlu2 %v100_v32 }
 0x25a   :  { %v68_v37 = vpop.xlane.xlu2 %67  ;;  %v35_v42 = vpop.xlane.xlu1 %34 }
 0x25b   :  { %v70_v38 = vadd.f32 %v68_v37, %v53_v35  ;;  %237 = vlog2.f32 %v35_v42 }
 0x25d   :  { %v71_v39 = vmin.f32 %v70_v38, 4.0  ;;  %v87_v40 = vadd.f32 %v85_v36, %v70_v38  ;;  %v86_v46 = vmax.f32 %v70_v38, 0.0 }
 0x25e   :  { %41 = vadd.xlane.f32.xlu2 %v40_v34  ;;  %v169_v34 = vld [vmem:[#allocation3] sm:$0x1] }
 0x25f   :  { %v72_v43 = vsub.f32 %v71_v39, %v69_v41  ;;  %v88_v44 = vmin.f32 %v87_v40, 4.0  ;;  %v103_v57 = vmax.f32 %v87_v40, 0.0 }
 0x261   :  { %v73_v47 = vmax.f32 %v72_v43, 0.0  ;;  %v89_v48 = vsub.f32 %v88_v44, %v86_v46  ;;  %v238_v50 = vpop.eup %237 }
 0x262   :  { %v37_v56 = vmul.f32 0.6931472, %v238_v50 }
 0x263   :  { %v74_v52 = vmul.f32 %v73_v47, %v62_v12  ;;  %v90_v53 = vmax.f32 %v89_v48, 0.0 }
 0x264   :  { %v38_v63 = vadd.f32 %v37_v56, %v29_v18 }
 0x265   :  { %v75_v59 = vadd.f32 %v74_v52, %v57_v55  ;;  %v91_v60 = vmul.f32 %v90_v53, %v79_v21 }
 0x267   :  { %v92_v1 = vadd.f32 %v91_v60, %v75_v59 }
 0x2c9   :  { %v102_v51 = vpop.xlane.xlu2 %101 }
 0x2ca   :  { %v104_v54 = vadd.f32 %v102_v51, %v87_v40 }
 0x2cc   :  { %v105_v58 = vmin.f32 %v104_v54, 4.0  ;;  %v170_v54 = vld [vmem:[#allocation4] sm:$0x1] }
 0x2ce   :  { %v106_v61 = vsub.f32 %v105_v58, %v103_v57 }
 0x2d0   :  { %v107_v62 = vmax.f32 %v106_v61, 0.0 }
 0x2d1   :  { %v42_v0 = vpop.xlane.xlu2 %41 }
 0x2d2   :  { %v108_v2 = vmul.f32 %v107_v62, %v96_v30  ;;  %v43_v3 = vsub.f32 %v38_v63, %v42_v0  ;;  %v181_v30 = vld [vmem:[#allocation2] sm:$0x1] }
 0x2d4   :  { %v109_v4 = vadd.f32 %v108_v2, %v92_v1  ;;  %v113_v5 = vsel %vm112_vm6, %v43_v3, 0.0 }
 0x2d5   :  { %114 = vadd.xlane.f32.xlu1 %v113_v5 }
 0x2d6   :  { %v110_v6 = vmul.f32 0.25, %v109_v4 }
 0x2d8   :  { %v125_v7 = vsel %vm112_vm6, %v110_v6, 0.0  ;;  %v137_v8 = vrot.slane %v110_v6, 4 }
 0x2d9   :  { %126 = vadd.xlane.f32.xlu2 %v125_v7 }
 0x2da   :  { %v138_v10 = vmax.f32 %v110_v6, %v137_v8 }
 0x2dc   :  { %v139_v14 = vrot.slane %v138_v10, 2 }
 0x2de   :  { %v140_v20 = vmax.f32 %v138_v10, %v139_v14 }
 0x2e0   :  { %v141_v25 = vrot.slane %v140_v20, 1 }
 0x2e2   :  { %v142_v28 = vmax.f32 %v140_v20, %v141_v25 }
 0x348   :  { %v115_v9 = vpop.xlane.xlu1 %114 }
 0x349   :  { %v116_v11 = vrot.slane %v115_v9, 4 }
 0x34b   :  { %v117_v12 = vadd.f32 %v116_v11, %v115_v9 }
 0x34c   :  { %v127_v13 = vpop.xlane.xlu2 %126 }
 0x34d   :  { %v118_v16 = vrot.slane %v117_v12, 2  ;;  %v128_v17 = vrot.slane %v127_v13, 4 }
 0x34f   :  { %v129_v18 = vadd.f32 %v128_v17, %v127_v13  ;;  %v119_v19 = vadd.f32 %v118_v16, %v117_v12 }
 0x351   :  { %v130_v21 = vrot.slane %v129_v18, 2  ;;  %v120_v22 = vrot.slane %v119_v19, 1 }
 0x353   :  { %v131_v23 = vadd.f32 %v130_v21, %v129_v18  ;;  %v121_v24 = vadd.f32 %v120_v22, %v119_v19 }
 0x355   :  { %222 = vpush %v121_v24  ;;  %v132_v26 = vrot.slane %v131_v23, 1 }
 0x357   :  { %v133_v27 = vadd.f32 %v132_v26, %v131_v23 }
 0x359   :  { %224 = vpush %v133_v27 }
 0x35a   :  { %226 = vpush %v142_v28 }
 0x386   :  { %s223_s0 = spop %222 }
 0x387   :  { %v123_v31 = vstv %s223_s0 }
 0x388   :  { %v182_v32 = vadd.f32 %v181_v30, %v123_v31 }
 0x38a   :  { %188 = vst.msk [vmem:[#allocation2] sm:$0x1] %vm164_vm7, %v182_v32  ;;  %s225_s1 = spop %224  ;;  %v193_v1 = vmul.f32 0.125, %v182_v32 }
 0x38b   :  { %v135_v35 = vstv %s225_s1  ;;  %s227_s13 = spop %226 }
 0x38c   :  { %v184_v36 = vadd.f32 %v183_v33, %v135_v35  ;;  %v144_v37 = vstv %s227_s13 }
 0x38d   :  { %v145_v38 = vsub.f32 %v110_v6, %v144_v37  ;;  %v171_v39 = vmax.f32 %v169_v34, %v144_v37 }
 0x38e   :  { %189 = vst.msk [vmem:[#allocation5] sm:$0x1] %vm164_vm7, %v184_v36 }
 0x38f   :  { %v146_v15 = vmul.f32 1.442695, %v145_v38  ;;  %186 = vst.msk [vmem:[#allocation3] sm:$0x1] %vm164_vm7, %v171_v39  ;;  %v172_v49 = vsub.f32 %v169_v34, %v171_v39  ;;  %v176_v50 = vsub.f32 %v144_v37, %v171_v39 }
 0x391   :  { %239 = vpow2.f32 %v146_v15  ;;  %v173_v51 = vmul.f32 1.442695, %v172_v49  ;;  %v177_v52 = vmul.f32 1.442695, %v176_v50 }
 0x393   :  { %241 = vpow2.f32 %v173_v51 }
 0x394   :  { %243 = vpow2.f32 %v177_v52 }
 0x397   :  { %v240_v40 = vpop.eup %239 }
 0x398   :  { %v149_v41 = vsel %vm112_vm6, %v240_v40, 0.0 }
 0x399   :  { %150 = vadd.xlane.f32.xlu1 %v149_v41  ;;  %v242_v53 = vpop.eup %241 }
 0x39a   :  { %v244_v55 = vpop.eup %243  ;;  %v175_v57 = vmul.f32 %v242_v53, %v170_v54 }
 0x40c   :  { %v151_v42 = vpop.xlane.xlu1 %150 }
 0x40d   :  { %v152_v43 = vrot.slane %v151_v42, 4 }
 0x40f   :  { %v153_v44 = vadd.f32 %v152_v43, %v151_v42 }
 0x411   :  { %v154_v45 = vrot.slane %v153_v44, 2 }
 0x413   :  { %v155_v46 = vadd.f32 %v154_v45, %v153_v44 }
 0x415   :  { %v156_v47 = vrot.slane %v155_v46, 1 }
 0x417   :  { %v157_v48 = vadd.f32 %v156_v47, %v155_v46 }
 0x419   :  { %228 = vpush %v157_v48 }
 0x44a   :  { %s229_s14 = spop %228 }
 0x44b   :  { %v159_v56 = vstv %s229_s14 }
 0x44c   :  { %v179_v58 = vmul.f32 %v244_v55, %v159_v56 }
 0x44e   :  { %v180_v59 = vadd.f32 %v179_v58, %v175_v57 }
 0x450   :  { %187 = vst.msk [vmem:[#allocation4] sm:$0x1] %vm164_vm7, %v180_v59  ;;  %245 = vlog2.f32 %v180_v59 }
 0x456   :  { %v246_v60 = vpop.eup %245 }
 0x457   :  { %v195_v61 = vmul.f32 0.6931472, %v246_v60 }
 0x459   :  { %v196_v62 = vadd.f32 %v195_v61, %v171_v39 }
 0x45b   :  { %v197_v63 = vmul.f32 8.0, %v196_v62 }
 0x45d   :  { %v198_v0 = vsub.f32 %v197_v63, %v184_v36 }
 0x45f   :  { %v199_v2 = vmul.f32 0.001, %v198_v0 }
 0x461   :  { %v200_v3 = vadd.f32 %v199_v2, %v193_v1 }
 0x463   :  { %201 = vst.msk [vmem:[#allocation6] sm:$0x1] %vm164_vm7, %v200_v3 }
 0x464   :  { %212 = dma.vmem_to_hbm [thread:$0]  %s208_s16, 16, %s210_s19, [#allocation7]  }
 0x465   :  { %271 = dma.done.wait [#allocation7], 16  }
 0x466   :  { %272 = vsyncadd [#allocation7], 4294967280 }
 0x467   :  { %217 = vsyncpa [#allocation7], 1 }

</bundles_post_ra>
